<compile_context>
chip_gen: v7x
topology: tpu7x:2x2x1
jax: 0.10.0
libtpu: 0.0.40
codegen_flags: <defaults>
</compile_context>

<pallas_src>
import functools

import jax
import jax.numpy as jnp
from jax import lax
from jax.experimental import pallas as pl
from jax.experimental.pallas import tpu as pltpu


def _round_up(x, m):
    return (x + m - 1) // m * m


def _log_sigmoid(x):
    # Stable log(sigmoid(x)) = min(x, 0) - log(1 + exp(-|x|)); never -inf/NaN.
    return jnp.minimum(x, 0.0) - jnp.log(1.0 + jnp.exp(-jnp.abs(x)))


def _tpu_budgets():
    """Generation-aware (vmem_limit_bytes, per_step_budget_bytes, num_splits)."""
    kind = ""
    try:
        kind = jax.devices()[0].device_kind.lower()
    except Exception:  # pragma: no cover - defensive, keeps the script runnable
        pass
    is_v7 = "v7" in kind
    vmem_total = 64 * 1024 * 1024 if is_v7 else 128 * 1024 * 1024
    try:
        info = pltpu.get_tpu_info()
        vmem_total = int(getattr(info, "vmem_capacity_bytes", vmem_total))
    except Exception:  # pragma: no cover
        pass
    # ~48 MiB limit on v7x (64 MiB VMEM/TC), ~96 MiB on v5e/v6e (128 MiB VMEM).
    vmem_limit = max(min(vmem_total * 3 // 4, 96 * 1024 * 1024), 32 * 1024 * 1024)
    step_budget = (16 if vmem_total <= 64 * 1024 * 1024 else 32) * 1024 * 1024
    # One N-shard per TensorCore on v7x; single shard on v5e/v6e (extra "core"
    # axis would just be serial-loop overhead there).
    # TODO(synk): on v7x, verify in the trace that the size-2 "parallel" axis
    # really shards across the two TensorCores; if not, switch that axis to
    # pltpu.CORE_PARALLEL (the per-core partial-output plumbing already copes).
    num_splits = 2 if is_v7 else 1
    return vmem_limit, step_budget, num_splits


# ---------------------------------------------------------------------------
# Path A: embedding tables resident in VMEM, gather + reductions on the MXU.
# ---------------------------------------------------------------------------
def neg_loss_gather_kernel(rep_ref, out_ids_ref, noise_ref,
                           in_tab_ref, out_tab_ref, partial_ref, acc_ref, *,
                           n_valid, tile_n, tiles_per_core, num_sampled, c_pad):
    core = pl.program_id(0)      # "parallel" axis (one shard per TC on v7x)
    step = pl.program_id(1)      # "arbitrary" accumulation axis over N tiles

    @pl.when(step == 0)
    def _init():
        acc_ref[...] = jnp.zeros_like(acc_ref)

    tab_dtype = in_tab_ref.dtype
    e_pad = in_tab_ref.shape[1]
    in_tab = in_tab_ref[...]                 # [C_pad, E_pad] (VMEM-resident)
    out_tab = out_tab_ref[...]               # [C_pad, E_pad]

    class_iota = lax.broadcasted_iota(jnp.int32, (tile_n, c_pad), 1)
    ones_e = jnp.ones((e_pad, 1), jnp.float32)

    def one_hot(ids):                        # ids: [tile_n, 1] int32
        return jnp.where(class_iota == ids, 1.0, 0.0).astype(tab_dtype)

    # In-kernel gather: one_hot(ids) @ table runs on the (otherwise idle) MXU
    # with bf16 operands and f32 accumulation -> exact row selection, no XLA
    # jnp.take, no [N, S, E] slab in HBM.
    in_rows = jnp.dot(one_hot(rep_ref[...]), in_tab,
                      preferred_element_type=jnp.float32)           # [tile_n, E]
    out_rows = jnp.dot(one_hot(out_ids_ref[...]), out_tab,
                       preferred_element_type=jnp.float32)          # [tile_n, E]

    # E-reduction on the MXU (prod @ ones) instead of an XLU cross-lane sum.
    pos = jnp.dot(in_rows * out_rows, ones_e,
                  preferred_element_type=jnp.float32)               # [tile_n, 1]
    per_row = _log_sigmoid(pos)

    noise_ids = noise_ref[...]                                       # [tile_n, S]
    for s in range(num_sampled):
        rows_s = jnp.dot(one_hot(noise_ids[:, s:s + 1]), out_tab,
                         preferred_element_type=jnp.float32)        # [tile_n, E]
        score_s = jnp.dot(rows_s * in_rows, ones_e,
                          preferred_element_type=jnp.float32)       # [tile_n, 1]
        # PyTorch negates the noise embeddings before the bmm; folded into
        # log_sigmoid(-score) here.
        per_row = per_row + _log_sigmoid(-score_s)

    # Zero rows that only exist because N was padded to whole tiles / cores.
    row0 = (core * tiles_per_core + step) * tile_n
    rows = row0 + lax.broadcasted_iota(jnp.int32, (tile_n, 128), 0)
    masked = jnp.where(rows < n_valid, per_row, 0.0)                 # [tile_n, 128]
    acc_ref[...] = acc_ref[...] + jnp.sum(masked, axis=0, keepdims=True)

    @pl.when(step == pl.num_programs(1) - 1)
    def _finalize():
        partial_ref[...] = acc_ref[...]


# ---------------------------------------------------------------------------
# Path B (fallback for huge vocabularies): gather with XLA outside, stream the
# gathered bf16 slabs through a tiled reduction (v2 structure).
# ---------------------------------------------------------------------------
def neg_loss_stream_kernel(inp_ref, outp_ref, noise_ref, partial_ref, acc_ref, *,
                           n_valid, tile_n, tiles_per_core):
    core = pl.program_id(0)
    step = pl.program_id(1)

    @pl.when(step == 0)
    def _init():
        acc_ref[...] = jnp.zeros_like(acc_ref)

    inp = inp_ref[...].astype(jnp.float32)            # [tile_n, E]  (small)
    outp = outp_ref[...].astype(jnp.float32)
    pos = jnp.sum(inp * outp, axis=-1, keepdims=True)                # [tile_n, 1]
    # Dominant [tile_n, S, E] stream stays in its bf16 storage dtype; the f32
    # conversion fuses into the multiply/reduce rather than materializing a
    # whole-tile f32 copy.
    neg = jnp.sum(noise_ref[...].astype(jnp.float32) * inp[:, None, :],
                  axis=-1)                                           # [tile_n, S]
    per_row = _log_sigmoid(pos) + jnp.sum(_log_sigmoid(-neg), axis=-1,
                                          keepdims=True)             # [tile_n, 1]

    row0 = (core * tiles_per_core + step) * tile_n
    rows = row0 + lax.broadcasted_iota(jnp.int32, (tile_n, 128), 0)
    masked = jnp.where(rows < n_valid, per_row, 0.0)
    acc_ref[...] = acc_ref[...] + jnp.sum(masked, axis=0, keepdims=True)

    @pl.when(step == pl.num_programs(1) - 1)
    def _finalize():
        partial_ref[...] = acc_ref[...]


def neg_loss(in_embed_w, out_embed_w, input_labels, out_labels, noise_idx,
             *, stream_dtype=jnp.bfloat16):
    """Forward pass of NEG_loss.

    in_embed_w, out_embed_w : [num_classes, embed_size] f32
    input_labels            : [batch_size] int32
    out_labels              : [batch_size, window_size] int32
    noise_idx               : [batch_size*window_size, num_sampled] int32
    returns scalar f32 loss
    """
    batch_size, window_size = out_labels.shape
    n = batch_size * window_size
    num_sampled = noise_idx.shape[-1]
    num_classes, embed_size = in_embed_w.shape

    e_pad = _round_up(embed_size, 128)
    c_pad = _round_up(num_classes, 128)
    itemsize = jnp.dtype(stream_dtype).itemsize
    vmem_limit, step_budget, num_splits = _tpu_budgets()

    # input_labels has shape [B]; PyTorch's x.repeat(1, W).view(-1) on a 1-D
    # tensor broadcasts to [1, B] and tiles the whole vector W times, i.e.
    # jnp.tile (NOT element-wise repeat).
    rep_in = jnp.tile(input_labels.astype(jnp.int32), window_size)     # [n]
    out_flat = out_labels.reshape(-1).astype(jnp.int32)                # [n]
    noise_flat = noise_idx.astype(jnp.int32)                           # [n, S]

    # Both tables, double-buffered by the pipeline.
    table_bytes = 2 * 2 * c_pad * e_pad * itemsize
    use_resident_tables = table_bytes <= vmem_limit // 2

    if use_resident_tables:
        # -------- Path A: in-kernel gather against VMEM-resident tables -----
        in_tab = jnp.pad(in_embed_w.astype(jnp.float32),
                         ((0, c_pad - num_classes),
                          (0, e_pad - embed_size))).astype(stream_dtype)
        out_tab = jnp.pad(out_embed_w.astype(jnp.float32),
                          ((0, c_pad - num_classes),
                           (0, e_pad - embed_size))).astype(stream_dtype)

        # tile_n from the per-step temporary budget (no hard 1024 cap).
        row_tmp_bytes = 4 * c_pad * itemsize + 6 * e_pad * 4 + 4 * (num_sampled + 2)
        budget = max(2 * 1024 * 1024,
                     min(step_budget, (vmem_limit - table_bytes) // 2))
        tile_n = max(16, min((budget // row_tmp_bytes) // 16 * 16, 4096))
        tile_n = min(tile_n, _round_up(n, 16))

        n_blocks = _round_up(int(pl.cdiv(n, tile_n)), num_splits)
        tiles_per_core = n_blocks // num_splits
        n_pad = n_blocks * tile_n

        rep_p = jnp.pad(rep_in, (0, n_pad - n)).reshape(n_pad, 1)
        out_p = jnp.pad(out_flat, (0, n_pad - n)).reshape(n_pad, 1)
        noise_p = jnp.pad(noise_flat, ((0, n_pad - n), (0, 0)))        # [n_pad, S]

        kernel = functools.partial(
            neg_loss_gather_kernel, n_valid=n, tile_n=tile_n,
            tiles_per_core=tiles_per_core, num_sampled=num_sampled, c_pad=c_pad)

        cost = pl.CostEstimate(
            flops=2 * n_pad * ((num_sampled + 2) * c_pad * e_pad
                               + (num_sampled + 1) * e_pad),
            transcendentals=2 * n_pad * (num_sampled + 1),
            bytes_accessed=(2 * c_pad * e_pad * itemsize          # tables, once
                            + 4 * n_pad * (num_sampled + 2)        # int32 ids
                            + 4 * num_splits * 128))

        partials = pl.pallas_call(
            kernel,
            out_shape=jax.ShapeDtypeStruct((1, num_splits * 128), jnp.float32),
            grid_spec=pltpu.PrefetchScalarGridSpec(
                num_scalar_prefetch=0,
                grid=(num_splits, tiles_per_core),
                in_specs=[
                    pl.BlockSpec((tile_n, 1),
                                 lambda c, i: (c * tiles_per_core + i, 0)),
                    pl.BlockSpec((tile_n, 1),
                                 lambda c, i: (c * tiles_per_core + i, 0)),
                    pl.BlockSpec((tile_n, num_sampled),
                                 lambda c, i: (c * tiles_per_core + i, 0)),
                    pl.BlockSpec((c_pad, e_pad), lambda c, i: (0, 0)),  # resident
                    pl.BlockSpec((c_pad, e_pad), lambda c, i: (0, 0)),  # resident
                ],
                out_specs=pl.BlockSpec((1, 128), lambda c, i: (0, c)),
                scratch_shapes=[pltpu.VMEM((1, 128), jnp.float32)],
            ),
            compiler_params=pltpu.CompilerParams(
                dimension_semantics=("parallel", "arbitrary"),
                vmem_limit_bytes=vmem_limit),
            cost_estimate=cost,
        )(rep_p, out_p, noise_p, in_tab, out_tab)
    else:
        # -------- Path B: XLA gather outside, stream gathered bf16 slabs ----
        # TODO(synk): replace with memory_space=pl.ANY tables + per-tile row
        # DMA gather so the [N, S, E] slab never hits HBM even for huge vocab.
        row_bytes = (num_sampled + 2) * e_pad * itemsize
        tile_n = max(16, min((step_budget // row_bytes) // 16 * 16, 8192))
        tile_n = min(tile_n, _round_up(n, 16))
        n_blocks = _round_up(int(pl.cdiv(n, tile_n)), num_splits)
        tiles_per_core = n_blocks // num_splits
        n_pad = n_blocks * tile_n

        in_w = jnp.pad(in_embed_w.astype(jnp.float32),
                       ((0, 0), (0, e_pad - embed_size))).astype(stream_dtype)
        out_w = jnp.pad(out_embed_w.astype(jnp.float32),
                        ((0, 0), (0, e_pad - embed_size))).astype(stream_dtype)
        rep_p = jnp.pad(rep_in, (0, n_pad - n))
        out_p = jnp.pad(out_flat, (0, n_pad - n))
        noise_p = jnp.pad(noise_flat, ((0, n_pad - n), (0, 0))).reshape(-1)

        input_emb = jnp.take(in_w, rep_p, axis=0)                    # [Npad, Epad]
        output_emb = jnp.take(out_w, out_p, axis=0)                  # [Npad, Epad]
        noise_emb = jnp.take(out_w, noise_p, axis=0).reshape(
            n_pad, num_sampled, e_pad)                               # [Npad, S, Epad]

        kernel = functools.partial(neg_loss_stream_kernel, n_valid=n,
                                   tile_n=tile_n, tiles_per_core=tiles_per_core)
        cost = pl.CostEstimate(
            flops=2 * n_pad * (num_sampled + 1) * e_pad,
            transcendentals=2 * n_pad * (num_sampled + 1),
            bytes_accessed=itemsize * n_pad * e_pad * (num_sampled + 2)
            + 4 * num_splits * 128)

        partials = pl.pallas_call(
            kernel,
            out_shape=jax.ShapeDtypeStruct((1, num_splits * 128), jnp.float32),
            grid_spec=pltpu.PrefetchScalarGridSpec(
                num_scalar_prefetch=0,
                grid=(num_splits, tiles_per_core),
                in_specs=[
                    pl.BlockSpec((tile_n, e_pad),
                                 lambda c, i: (c * tiles_per_core + i, 0)),
                    pl.BlockSpec((tile_n, e_pad),
                                 lambda c, i: (c * tiles_per_core + i, 0)),
                    # TODO(synk): add pipeline_mode=pl.Buffered(3) here if the
                    # trace shows DMA exposed at tile boundaries.
                    pl.BlockSpec((tile_n, num_sampled, e_pad),
                                 lambda c, i: (c * tiles_per_core + i, 0, 0)),
                ],
                out_specs=pl.BlockSpec((1, 128), lambda c, i: (0, c)),
                scratch_shapes=[pltpu.VMEM((1, 128), jnp.float32)],
            ),
            compiler_params=pltpu.CompilerParams(
                dimension_semantics=("parallel", "arbitrary"),
                vmem_limit_bytes=vmem_limit),
            cost_estimate=cost,
        )(input_emb, output_emb, noise_emb)

    per_core = partials.reshape(num_splits, 128)[:, 0]   # lane 0 of each core
    return -jnp.sum(per_core) / jnp.float32(batch_size)


if __name__ == "__main__":
    num_classes = 50
    embed_size = 32
    batch_size = 2
    window_size = 4
    num_sampled = 5

    key = jax.random.PRNGKey(0)
    k_in, k_out, k_il, k_ol, k_noise = jax.random.split(key, 5)

    # Parameters: uniform(-1, 1), matching nn.Embedding weight init in the module.
    in_embed_w = jax.random.uniform(k_in, (num_classes, embed_size),
                                    minval=-1.0, maxval=1.0, dtype=jnp.float32)
    out_embed_w = jax.random.uniform(k_out, (num_classes, embed_size),
                                     minval=-1.0, maxval=1.0, dtype=jnp.float32)

    input_labels = jax.random.randint(k_il, (batch_size,), 0, num_classes,
                                      dtype=jnp.int32)
    out_labels = jax.random.randint(k_ol, (batch_size, window_size), 0,
                                    num_classes, dtype=jnp.int32)
    # Noise indices drawn outside the kernel for determinism (PyTorch draws
    # them with torch's RNG inside forward).
    noise_idx = jax.random.randint(
        k_noise, (batch_size * window_size, num_sampled), 0, num_classes,
        dtype=jnp.int32)

    loss = neg_loss(in_embed_w, out_embed_w, input_labels, out_labels, noise_idx)
    jax.block_until_ready(loss)

    # Pure-JAX reference of the same math, using the same bf16-quantized tables
    # the kernel streams (stable log-sigmoid formulation).
    n = batch_size * window_size
    in_q = in_embed_w.astype(jnp.bfloat16).astype(jnp.float32)
    out_q = out_embed_w.astype(jnp.bfloat16).astype(jnp.float32)
    rep_in = jnp.tile(input_labels, window_size)
    inp = in_q[rep_in]
    outp = out_q[out_labels.reshape(-1)]
    noise = out_q[noise_idx.reshape(-1)].reshape(n, num_sampled, embed_size)
    log_target = jax.nn.log_sigmoid(jnp.sum(inp * outp, axis=-1))
    sum_log_sampled = jnp.sum(
        jax.nn.log_sigmoid(-jnp.einsum("nse,ne->ns", noise, inp)), axis=-1)
    ref = -(log_target + sum_log_sampled).sum() / batch_size
    assert jnp.allclose(loss, ref, rtol=1e-4, atol=1e-4), (loss, ref)

    print("KERNEL_OK")
</pallas_src>

<mosaic_0001>
module attributes {stable_mosaic.version = 11 : i64} {
  func.func @neg_loss_gather_kernel(%arg0: i32, %arg1: i32, %arg2: memref<16x1xi32, #tpu.memory_space<vmem>>, %arg3: memref<16x1xi32, #tpu.memory_space<vmem>>, %arg4: memref<16x5xi32, #tpu.memory_space<vmem>>, %arg5: memref<128x128xbf16, #tpu.memory_space<vmem>>, %arg6: memref<128x128xbf16, #tpu.memory_space<vmem>>, %arg7: memref<1x128xf32, #tpu.memory_space<vmem>>, %arg8: memref<1x128xf32, #tpu.memory_space<vmem>>) attributes {dimension_semantics = [#tpu.dimension_semantics<parallel>, #tpu.dimension_semantics<arbitrary>], iteration_bounds = array<i64: 1, 1>, scalar_prefetch = 0 : i64, scratch_operands = 1 : i64, tpu.core_type = #tpu.core_type<tc>, window_params = [{transform_indices = @transform_0, window_bounds = array<i64: 16, 1>}, {transform_indices = @transform_1, window_bounds = array<i64: 16, 1>}, {transform_indices = @transform_2, window_bounds = array<i64: 16, 5>}, {pipeline_mode = #tpu.pipeline_mode<synchronous>, transform_indices = @transform_3, window_bounds = array<i64: 128, 128>}, {pipeline_mode = #tpu.pipeline_mode<synchronous>, transform_indices = @transform_4, window_bounds = array<i64: 128, 128>}, {transform_indices = @transform_5, window_bounds = array<i64: 1, 128>}]} {
    %c0_i32 = arith.constant 0 : i32
    %0 = arith.cmpi eq, %arg1, %c0_i32 : i32
    %1 = arith.extui %0 : i1 to i32
    %c0_i32_0 = arith.constant 0 : i32
    %2 = arith.cmpi ne, %1, %c0_i32_0 : i32
    scf.if %2 {
      %cst_68 = arith.constant 0.000000e+00 : f32
      %171 = vector.broadcast %cst_68 : f32 to vector<1x128xf32>
      %c0_69 = arith.constant 0 : index
      %c0_70 = arith.constant 0 : index
      %172 = vector.load %arg8[%c0_69, %c0_70] : memref<1x128xf32, #tpu.memory_space<vmem>>, vector<1x128xf32>
      tpu.vector_store %arg8[%c0_69, %c0_70], %171 {strides = array<i32>} : memref<1x128xf32, #tpu.memory_space<vmem>>, vector<1x128xf32>,
    } else {
    }
    %c0 = arith.constant 0 : index
    %c0_1 = arith.constant 0 : index
    %3 = vector.load %arg5[%c0, %c0_1] : memref<128x128xbf16, #tpu.memory_space<vmem>>, vector<128x128xbf16>
    %c0_2 = arith.constant 0 : index
    %c0_3 = arith.constant 0 : index
    %4 = vector.load %arg6[%c0_2, %c0_3] : memref<128x128xbf16, #tpu.memory_space<vmem>>, vector<128x128xbf16>
    %5 = tpu.iota {dimensions = array<i32: 1>} : vector<16x128xi32>
    %cst = arith.constant 1.000000e+00 : f32
    %6 = vector.broadcast %cst : f32 to vector<128x1xf32>
    %c0_4 = arith.constant 0 : index
    %c0_5 = arith.constant 0 : index
    %7 = vector.load %arg2[%c0_4, %c0_5] : memref<16x1xi32, #tpu.memory_space<vmem>>, vector<16x1xi32>
    %8 = vector.broadcast %7 : vector<16x1xi32> to vector<16x128xi32>
    %9 = arith.cmpi eq, %5, %8 : vector<16x128xi32>
    %cst_6 = arith.constant 1.000000e+00 : f32
    %cst_7 = arith.constant 0.000000e+00 : f32
    %10 = vector.broadcast %cst_6 : f32 to vector<16x128xf32>
    %11 = vector.broadcast %cst_7 : f32 to vector<16x128xf32>
    %12 = arith.select %9, %10, %11 : vector<16x128xi1>, vector<16x128xf32>
    %13 = arith.truncf %12 : vector<16x128xf32> to vector<16x128xbf16>
    %cst_8 = arith.constant dense<0.000000e+00> : vector<16x128xf32>
    %14 = tpu.matmul %13, %3, %cst_8 {dimension_numbers = #tpu.dot_dimension_numbers<[1], [0], [0], [1], [0, 0, 1, 1], [], []>} : vector<16x128xbf16>, vector<128x128xbf16>, vector<16x128xf32> -> vector<16x128xf32>
    %c0_9 = arith.constant 0 : index
    %c0_10 = arith.constant 0 : index
    %15 = vector.load %arg3[%c0_9, %c0_10] : memref<16x1xi32, #tpu.memory_space<vmem>>, vector<16x1xi32>
    %16 = vector.broadcast %15 : vector<16x1xi32> to vector<16x128xi32>
    %17 = arith.cmpi eq, %5, %16 : vector<16x128xi32>
    %cst_11 = arith.constant 1.000000e+00 : f32
    %cst_12 = arith.constant 0.000000e+00 : f32
    %18 = vector.broadcast %cst_11 : f32 to vector<16x128xf32>
    %19 = vector.broadcast %cst_12 : f32 to vector<16x128xf32>
    %20 = arith.select %17, %18, %19 : vector<16x128xi1>, vector<16x128xf32>
    %21 = arith.truncf %20 : vector<16x128xf32> to vector<16x128xbf16>
    %cst_13 = arith.constant dense<0.000000e+00> : vector<16x128xf32>
    %22 = tpu.matmul %21, %4, %cst_13 {dimension_numbers = #tpu.dot_dimension_numbers<[1], [0], [0], [1], [0, 0, 1, 1], [], []>} : vector<16x128xbf16>, vector<128x128xbf16>, vector<16x128xf32> -> vector<16x128xf32>
    %23 = arith.mulf %14, %22 : vector<16x128xf32>
    %cst_14 = arith.constant dense<0.000000e+00> : vector<16x1xf32>
    %24 = tpu.matmul %23, %6, %cst_14 {dimension_numbers = #tpu.dot_dimension_numbers<[1], [0], [0], [1], [0, 0, 1, 1], [], []>} : vector<16x128xf32>, vector<128x1xf32>, vector<16x1xf32> -> vector<16x1xf32>
    %cst_15 = arith.constant 0.000000e+00 : f32
    %25 = vector.broadcast %cst_15 : f32 to vector<16x1xf32>
    %26 = arith.minimumf %24, %25 : vector<16x1xf32>
    %27 = math.absf %24 : vector<16x1xf32>
    %cst_16 = arith.constant 0.000000e+00 : f32
    %28 = vector.broadcast %cst_16 : f32 to vector<16x1xf32>
    %29 = arith.subf %28, %27 : vector<16x1xf32>
    %30 = math.exp %29 : vector<16x1xf32>
    %cst_17 = arith.constant 1.000000e+00 : f32
    %31 = vector.broadcast %cst_17 : f32 to vector<16x1xf32>
    %32 = arith.addf %31, %30 : vector<16x1xf32>
    %33 = math.log %32 : vector<16x1xf32>
    %34 = arith.subf %26, %33 : vector<16x1xf32>
    %c0_18 = arith.constant 0 : index
    %c0_19 = arith.constant 0 : index
    %35 = vector.load %arg4[%c0_18, %c0_19] : memref<16x5xi32, #tpu.memory_space<vmem>>, vector<16x5xi32>
    %36 = vector.extract_strided_slice %35 {offsets = [0, 0], sizes = [16, 1], strides = [1, 1]} : vector<16x5xi32> to vector<16x1xi32>
    %37 = vector.broadcast %36 : vector<16x1xi32> to vector<16x128xi32>
    %38 = arith.cmpi eq, %5, %37 : vector<16x128xi32>
    %cst_20 = arith.constant 1.000000e+00 : f32
    %cst_21 = arith.constant 0.000000e+00 : f32
    %39 = vector.broadcast %cst_20 : f32 to vector<16x128xf32>
    %40 = vector.broadcast %cst_21 : f32 to vector<16x128xf32>
    %41 = arith.select %38, %39, %40 : vector<16x128xi1>, vector<16x128xf32>
    %42 = arith.truncf %41 : vector<16x128xf32> to vector<16x128xbf16>
    %cst_22 = arith.constant dense<0.000000e+00> : vector<16x128xf32>
    %43 = tpu.matmul %42, %4, %cst_22 {dimension_numbers = #tpu.dot_dimension_numbers<[1], [0], [0], [1], [0, 0, 1, 1], [], []>} : vector<16x128xbf16>, vector<128x128xbf16>, vector<16x128xf32> -> vector<16x128xf32>
    %44 = arith.mulf %43, %14 : vector<16x128xf32>
    %cst_23 = arith.constant dense<0.000000e+00> : vector<16x1xf32>
    %45 = tpu.matmul %44, %6, %cst_23 {dimension_numbers = #tpu.dot_dimension_numbers<[1], [0], [0], [1], [0, 0, 1, 1], [], []>} : vector<16x128xf32>, vector<128x1xf32>, vector<16x1xf32> -> vector<16x1xf32>
    %cst_24 = arith.constant 0.000000e+00 : f32
    %46 = vector.broadcast %cst_24 : f32 to vector<16x1xf32>
    %47 = arith.subf %46, %45 : vector<16x1xf32>
    %cst_25 = arith.constant 0.000000e+00 : f32
    %48 = vector.broadcast %cst_25 : f32 to vector<16x1xf32>
    %49 = arith.minimumf %47, %48 : vector<16x1xf32>
    %50 = math.absf %47 : vector<16x1xf32>
    %cst_26 = arith.constant 0.000000e+00 : f32
    %51 = vector.broadcast %cst_26 : f32 to vector<16x1xf32>
    %52 = arith.subf %51, %50 : vector<16x1xf32>
    %53 = math.exp %52 : vector<16x1xf32>
    %cst_27 = arith.constant 1.000000e+00 : f32
    %54 = vector.broadcast %cst_27 : f32 to vector<16x1xf32>
    %55 = arith.addf %54, %53 : vector<16x1xf32>
    %56 = math.log %55 : vector<16x1xf32>
    %57 = arith.subf %49, %56 : vector<16x1xf32>
    %58 = arith.addf %34, %57 : vector<16x1xf32>
    %59 = vector.extract_strided_slice %35 {offsets = [0, 1], sizes = [16, 1], strides = [1, 1]} : vector<16x5xi32> to vector<16x1xi32>
    %60 = vector.broadcast %59 : vector<16x1xi32> to vector<16x128xi32>
    %61 = arith.cmpi eq, %5, %60 : vector<16x128xi32>
    %cst_28 = arith.constant 1.000000e+00 : f32
    %cst_29 = arith.constant 0.000000e+00 : f32
    %62 = vector.broadcast %cst_28 : f32 to vector<16x128xf32>
    %63 = vector.broadcast %cst_29 : f32 to vector<16x128xf32>
    %64 = arith.select %61, %62, %63 : vector<16x128xi1>, vector<16x128xf32>
    %65 = arith.truncf %64 : vector<16x128xf32> to vector<16x128xbf16>
    %cst_30 = arith.constant dense<0.000000e+00> : vector<16x128xf32>
    %66 = tpu.matmul %65, %4, %cst_30 {dimension_numbers = #tpu.dot_dimension_numbers<[1], [0], [0], [1], [0, 0, 1, 1], [], []>} : vector<16x128xbf16>, vector<128x128xbf16>, vector<16x128xf32> -> vector<16x128xf32>
    %67 = arith.mulf %66, %14 : vector<16x128xf32>
    %cst_31 = arith.constant dense<0.000000e+00> : vector<16x1xf32>
    %68 = tpu.matmul %67, %6, %cst_31 {dimension_numbers = #tpu.dot_dimension_numbers<[1], [0], [0], [1], [0, 0, 1, 1], [], []>} : vector<16x128xf32>, vector<128x1xf32>, vector<16x1xf32> -> vector<16x1xf32>
    %cst_32 = arith.constant 0.000000e+00 : f32
    %69 = vector.broadcast %cst_32 : f32 to vector<16x1xf32>
    %70 = arith.subf %69, %68 : vector<16x1xf32>
    %cst_33 = arith.constant 0.000000e+00 : f32
    %71 = vector.broadcast %cst_33 : f32 to vector<16x1xf32>
    %72 = arith.minimumf %70, %71 : vector<16x1xf32>
    %73 = math.absf %70 : vector<16x1xf32>
    %cst_34 = arith.constant 0.000000e+00 : f32
    %74 = vector.broadcast %cst_34 : f32 to vector<16x1xf32>
    %75 = arith.subf %74, %73 : vector<16x1xf32>
    %76 = math.exp %75 : vector<16x1xf32>
    %cst_35 = arith.constant 1.000000e+00 : f32
    %77 = vector.broadcast %cst_35 : f32 to vector<16x1xf32>
    %78 = arith.addf %77, %76 : vector<16x1xf32>
    %79 = math.log %78 : vector<16x1xf32>
    %80 = arith.subf %72, %79 : vector<16x1xf32>
    %81 = arith.addf %58, %80 : vector<16x1xf32>
    %82 = vector.extract_strided_slice %35 {offsets = [0, 2], sizes = [16, 1], strides = [1, 1]} : vector<16x5xi32> to vector<16x1xi32>
    %83 = vector.broadcast %82 : vector<16x1xi32> to vector<16x128xi32>
    %84 = arith.cmpi eq, %5, %83 : vector<16x128xi32>
    %cst_36 = arith.constant 1.000000e+00 : f32
    %cst_37 = arith.constant 0.000000e+00 : f32
    %85 = vector.broadcast %cst_36 : f32 to vector<16x128xf32>
    %86 = vector.broadcast %cst_37 : f32 to vector<16x128xf32>
    %87 = arith.select %84, %85, %86 : vector<16x128xi1>, vector<16x128xf32>
    %88 = arith.truncf %87 : vector<16x128xf32> to vector<16x128xbf16>
    %cst_38 = arith.constant dense<0.000000e+00> : vector<16x128xf32>
    %89 = tpu.matmul %88, %4, %cst_38 {dimension_numbers = #tpu.dot_dimension_numbers<[1], [0], [0], [1], [0, 0, 1, 1], [], []>} : vector<16x128xbf16>, vector<128x128xbf16>, vector<16x128xf32> -> vector<16x128xf32>
    %90 = arith.mulf %89, %14 : vector<16x128xf32>
    %cst_39 = arith.constant dense<0.000000e+00> : vector<16x1xf32>
    %91 = tpu.matmul %90, %6, %cst_39 {dimension_numbers = #tpu.dot_dimension_numbers<[1], [0], [0], [1], [0, 0, 1, 1], [], []>} : vector<16x128xf32>, vector<128x1xf32>, vector<16x1xf32> -> vector<16x1xf32>
    %cst_40 = arith.constant 0.000000e+00 : f32
    %92 = vector.broadcast %cst_40 : f32 to vector<16x1xf32>
    %93 = arith.subf %92, %91 : vector<16x1xf32>
    %cst_41 = arith.constant 0.000000e+00 : f32
    %94 = vector.broadcast %cst_41 : f32 to vector<16x1xf32>
    %95 = arith.minimumf %93, %94 : vector<16x1xf32>
    %96 = math.absf %93 : vector<16x1xf32>
    %cst_42 = arith.constant 0.000000e+00 : f32
    %97 = vector.broadcast %cst_42 : f32 to vector<16x1xf32>
    %98 = arith.subf %97, %96 : vector<16x1xf32>
    %99 = math.exp %98 : vector<16x1xf32>
    %cst_43 = arith.constant 1.000000e+00 : f32
    %100 = vector.broadcast %cst_43 : f32 to vector<16x1xf32>
    %101 = arith.addf %100, %99 : vector<16x1xf32>
    %102 = math.log %101 : vector<16x1xf32>
    %103 = arith.subf %95, %102 : vector<16x1xf32>
    %104 = arith.addf %81, %103 : vector<16x1xf32>
    %105 = vector.extract_strided_slice %35 {offsets = [0, 3], sizes = [16, 1], strides = [1, 1]} : vector<16x5xi32> to vector<16x1xi32>
    %106 = vector.broadcast %105 : vector<16x1xi32> to vector<16x128xi32>
    %107 = arith.cmpi eq, %5, %106 : vector<16x128xi32>
    %cst_44 = arith.constant 1.000000e+00 : f32
    %cst_45 = arith.constant 0.000000e+00 : f32
    %108 = vector.broadcast %cst_44 : f32 to vector<16x128xf32>
    %109 = vector.broadcast %cst_45 : f32 to vector<16x128xf32>
    %110 = arith.select %107, %108, %109 : vector<16x128xi1>, vector<16x128xf32>
    %111 = arith.truncf %110 : vector<16x128xf32> to vector<16x128xbf16>
    %cst_46 = arith.constant dense<0.000000e+00> : vector<16x128xf32>
    %112 = tpu.matmul %111, %4, %cst_46 {dimension_numbers = #tpu.dot_dimension_numbers<[1], [0], [0], [1], [0, 0, 1, 1], [], []>} : vector<16x128xbf16>, vector<128x128xbf16>, vector<16x128xf32> -> vector<16x128xf32>
    %113 = arith.mulf %112, %14 : vector<16x128xf32>
    %cst_47 = arith.constant dense<0.000000e+00> : vector<16x1xf32>
    %114 = tpu.matmul %113, %6, %cst_47 {dimension_numbers = #tpu.dot_dimension_numbers<[1], [0], [0], [1], [0, 0, 1, 1], [], []>} : vector<16x128xf32>, vector<128x1xf32>, vector<16x1xf32> -> vector<16x1xf32>
    %cst_48 = arith.constant 0.000000e+00 : f32
    %115 = vector.broadcast %cst_48 : f32 to vector<16x1xf32>
    %116 = arith.subf %115, %114 : vector<16x1xf32>
    %cst_49 = arith.constant 0.000000e+00 : f32
    %117 = vector.broadcast %cst_49 : f32 to vector<16x1xf32>
    %118 = arith.minimumf %116, %117 : vector<16x1xf32>
    %119 = math.absf %116 : vector<16x1xf32>
    %cst_50 = arith.constant 0.000000e+00 : f32
    %120 = vector.broadcast %cst_50 : f32 to vector<16x1xf32>
    %121 = arith.subf %120, %119 : vector<16x1xf32>
    %122 = math.exp %121 : vector<16x1xf32>
    %cst_51 = arith.constant 1.000000e+00 : f32
    %123 = vector.broadcast %cst_51 : f32 to vector<16x1xf32>
    %124 = arith.addf %123, %122 : vector<16x1xf32>
    %125 = math.log %124 : vector<16x1xf32>
    %126 = arith.subf %118, %125 : vector<16x1xf32>
    %127 = arith.addf %104, %126 : vector<16x1xf32>
    %128 = vector.extract_strided_slice %35 {offsets = [0, 4], sizes = [16, 1], strides = [1, 1]} : vector<16x5xi32> to vector<16x1xi32>
    %129 = vector.broadcast %128 : vector<16x1xi32> to vector<16x128xi32>
    %130 = arith.cmpi eq, %5, %129 : vector<16x128xi32>
    %cst_52 = arith.constant 1.000000e+00 : f32
    %cst_53 = arith.constant 0.000000e+00 : f32
    %131 = vector.broadcast %cst_52 : f32 to vector<16x128xf32>
    %132 = vector.broadcast %cst_53 : f32 to vector<16x128xf32>
    %133 = arith.select %130, %131, %132 : vector<16x128xi1>, vector<16x128xf32>
    %134 = arith.truncf %133 : vector<16x128xf32> to vector<16x128xbf16>
    %cst_54 = arith.constant dense<0.000000e+00> : vector<16x128xf32>
    %135 = tpu.matmul %134, %4, %cst_54 {dimension_numbers = #tpu.dot_dimension_numbers<[1], [0], [0], [1], [0, 0, 1, 1], [], []>} : vector<16x128xbf16>, vector<128x128xbf16>, vector<16x128xf32> -> vector<16x128xf32>
    %136 = arith.mulf %135, %14 : vector<16x128xf32>
    %cst_55 = arith.constant dense<0.000000e+00> : vector<16x1xf32>
    %137 = tpu.matmul %136, %6, %cst_55 {dimension_numbers = #tpu.dot_dimension_numbers<[1], [0], [0], [1], [0, 0, 1, 1], [], []>} : vector<16x128xf32>, vector<128x1xf32>, vector<16x1xf32> -> vector<16x1xf32>
    %cst_56 = arith.constant 0.000000e+00 : f32
    %138 = vector.broadcast %cst_56 : f32 to vector<16x1xf32>
    %139 = arith.subf %138, %137 : vector<16x1xf32>
    %cst_57 = arith.constant 0.000000e+00 : f32
    %140 = vector.broadcast %cst_57 : f32 to vector<16x1xf32>
    %141 = arith.minimumf %139, %140 : vector<16x1xf32>
    %142 = math.absf %139 : vector<16x1xf32>
    %cst_58 = arith.constant 0.000000e+00 : f32
    %143 = vector.broadcast %cst_58 : f32 to vector<16x1xf32>
    %144 = arith.subf %143, %142 : vector<16x1xf32>
    %145 = math.exp %144 : vector<16x1xf32>
    %cst_59 = arith.constant 1.000000e+00 : f32
    %146 = vector.broadcast %cst_59 : f32 to vector<16x1xf32>
    %147 = arith.addf %146, %145 : vector<16x1xf32>
    %148 = math.log %147 : vector<16x1xf32>
    %149 = arith.subf %141, %148 : vector<16x1xf32>
    %150 = arith.addf %127, %149 : vector<16x1xf32>
    %c1_i32 = arith.constant 1 : i32
    %151 = arith.muli %arg0, %c1_i32 : i32
    %152 = arith.addi %151, %arg1 : i32
    %c16_i32 = arith.constant 16 : i32
    %153 = arith.muli %152, %c16_i32 : i32
    %154 = tpu.iota {dimensions = array<i32: 0>} : vector<16x128xi32>
    %155 = vector.broadcast %153 : i32 to vector<16x128xi32>
    %156 = arith.addi %155, %154 : vector<16x128xi32>
    %c8_i32 = arith.constant 8 : i32
    %157 = vector.broadcast %c8_i32 : i32 to vector<16x128xi32>
    %158 = arith.cmpi slt, %156, %157 : vector<16x128xi32>
    %cst_60 = arith.constant 0.000000e+00 : f32
    %159 = vector.shape_cast %150 : vector<16x1xf32> to vector<16x1xf32>
    %160 = vector.broadcast %159 : vector<16x1xf32> to vector<16x128xf32>
    %161 = vector.broadcast %cst_60 : f32 to vector<16x128xf32>
    %162 = arith.select %158, %160, %161 : vector<16x128xi1>, vector<16x128xf32>
    %c0_61 = arith.constant 0 : index
    %c0_62 = arith.constant 0 : index
    %163 = vector.load %arg8[%c0_61, %c0_62] : memref<1x128xf32, #tpu.memory_space<vmem>>, vector<1x128xf32>
    %cst_63 = arith.constant dense<0.000000e+00> : vector<128xf32>
    %164 = vector.multi_reduction <add>, %162, %cst_63 [0] : vector<16x128xf32> to vector<128xf32>
    %165 = vector.shape_cast %164 : vector<128xf32> to vector<1x128xf32>
    %166 = arith.addf %163, %165 : vector<1x128xf32>
    %c0_64 = arith.constant 0 : index
    %c0_65 = arith.constant 0 : index
    %167 = vector.load %arg8[%c0_64, %c0_65] : memref<1x128xf32, #tpu.memory_space<vmem>>, vector<1x128xf32>
    tpu.vector_store %arg8[%c0_64, %c0_65], %166 {strides = array<i32>} : memref<1x128xf32, #tpu.memory_space<vmem>>, vector<1x128xf32>,
    %c0_i32_66 = arith.constant 0 : i32
    %168 = arith.cmpi eq, %arg1, %c0_i32_66 : i32
    %169 = arith.extui %168 : i1 to i32
    %c0_i32_67 = arith.constant 0 : i32
    %170 = arith.cmpi ne, %169, %c0_i32_67 : i32
    scf.if %170 {
      %c0_68 = arith.constant 0 : index
      %c0_69 = arith.constant 0 : index
      %171 = vector.load %arg8[%c0_68, %c0_69] : memref<1x128xf32, #tpu.memory_space<vmem>>, vector<1x128xf32>
      %c0_70 = arith.constant 0 : index
      %c0_71 = arith.constant 0 : index
      %172 = vector.load %arg7[%c0_70, %c0_71] : memref<1x128xf32, #tpu.memory_space<vmem>>, vector<1x128xf32>
      tpu.vector_store %arg7[%c0_70, %c0_71], %171 {strides = array<i32>} : memref<1x128xf32, #tpu.memory_space<vmem>>, vector<1x128xf32>,
    } else {
    }
    return
  }
  func.func @transform_0(%arg0: i32, %arg1: i32) -> (i32, i32) {
    %c1_i32 = arith.constant 1 : i32
    %0 = arith.muli %arg0, %c1_i32 : i32
    %1 = arith.addi %0, %arg1 : i32
    %c0_i32 = arith.constant 0 : i32
    %c0_i32_0 = arith.constant 0 : i32
    return %1, %c0_i32 : i32, i32
  }
  func.func @transform_1(%arg0: i32, %arg1: i32) -> (i32, i32) {
    %c1_i32 = arith.constant 1 : i32
    %0 = arith.muli %arg0, %c1_i32 : i32
    %1 = arith.addi %0, %arg1 : i32
    %c0_i32 = arith.constant 0 : i32
    %c0_i32_0 = arith.constant 0 : i32
    return %1, %c0_i32 : i32, i32
  }
  func.func @transform_2(%arg0: i32, %arg1: i32) -> (i32, i32) {
    %c1_i32 = arith.constant 1 : i32
    %0 = arith.muli %arg0, %c1_i32 : i32
    %1 = arith.addi %0, %arg1 : i32
    %c0_i32 = arith.constant 0 : i32
    %c0_i32_0 = arith.constant 0 : i32
    return %1, %c0_i32 : i32, i32
  }
  func.func @transform_3(%arg0: i32, %arg1: i32) -> (i32, i32) {
    %c0_i32 = arith.constant 0 : i32
    %c0_i32_0 = arith.constant 0 : i32
    %c0_i32_1 = arith.constant 0 : i32
    return %c0_i32, %c0_i32_0 : i32, i32
  }
  func.func @transform_4(%arg0: i32, %arg1: i32) -> (i32, i32) {
    %c0_i32 = arith.constant 0 : i32
    %c0_i32_0 = arith.constant 0 : i32
    %c0_i32_1 = arith.constant 0 : i32
    return %c0_i32, %c0_i32_0 : i32, i32
  }
  func.func @transform_5(%arg0: i32, %arg1: i32) -> (i32, i32) {
    %c0_i32 = arith.constant 0 : i32
    %c0_i32_0 = arith.constant 0 : i32
    return %c0_i32, %arg0 : i32, i32
  }
}

</mosaic_0001>

<bundles_post_ra>
// kernel: tpu_custom_call.1
= control target key start
LH: loop header
LB: loop body
LE: loop exit
PB: predicated region body
PF: predicated region fallthrough
CT: control target
= control target key end

     0   :  { %10 = vsyncpa [#allocation4], 0  ;;  %s2550_s0 = inlined_call_operand.hbm [shape: s32[16,1], index: 0, kind: input, shape index: {}]   ;;  %s2551_s1 = inlined_call_operand.hbm [shape: s32[16,1], index: 1, kind: input, shape index: {}]   ;;  %s2552_s2 = inlined_call_operand.hbm [shape: s32[16,5], index: 2, kind: input, shape index: {}]   ;;  %s2553_s3 = inlined_call_operand.hbm [shape: bf16[128,128], index: 3, kind: input, shape index: {}]   ;;  %s2554_s4 = inlined_call_operand.hbm [shape: bf16[128,128], index: 4, kind: input, shape index: {}]   ;;  %s2555_s5 = inlined_call_operand.hbm [shape: f32[1,128], index: 5, kind: output, shape index: {}]  }
   0x1   :  { %11 = vsyncpa [#allocation7], 0 }
   0x2   :  { %12 = vsyncpa [#allocation10], 0 }
   0x3   :  { %13 = vsyncpa [#allocation5], 0  ;;  %s2113_s18 = smov [#allocation6]   ;;  %s2114_s20 = smov [#allocation9]  }
   0x4   :  { %s39_s19 = sshll.u32 %s2113_s18, 4  ;;  %s67_s21 = sshll.u32 %s2114_s20, 4  ;;  %s40_s19 = int_to_ptr.vmem [resolvable:$true] %s39_s19  ;;  %s2161_s21 = int_to_ptr.vmem [resolvable:$true] %s67_s21 }
   0x5   :  { %s1973_s24 = scalar_lea.hbm %s2551_s1, 256 }
   0x6   :  { %p1974_p0 = scmp.ne.s32.totalorder %s2551_s1, %s1973_s24  ;;  %p1977_p1 = scmp.lt.u32.totalorder %s1973_s24, %s2551_s1 }
   0x8   :  { %p1979_p2 = pnand %p1977_p1, %p1974_p0 }
   0xa   :  { %1982 = shalt.err (!%p1979_p2)
}
   0xb   :  { %s1983_s29 = scalar_lea.vmem %s40_s19, 256  ;;  %p1988_p4 = scmp.lt.s32.totalorder %s40_s19, %s40_s19 }
   0xc   :  { %p1984_p3 = scmp.ne.s32.totalorder %s40_s19, %s1983_s29  ;;  %p1989_p5 = scmp.lt.s32.totalorder %s1983_s29, %s1983_s29 }
   0xe   :  { %p1990_p6 = por %p1989_p5, %p1988_p4 }
  0x10   :  { %p1991_p7 = pnand %p1990_p6, %p1984_p3 }
  0x12   :  { %1994 = shalt.err (!%p1991_p7)
}
  0x13   :  { %s2115_s30 = smov 128   ;;  %s2116_s6 = smov 8  }
  0x14   :  { %45 = dma.hbm_to_vmem [thread:$0]  %s2551_s1, 256, %s40_s19, [#allocation7], %s2115_s30, %s2115_s30, %s2116_s6  }
  0x15   :  { %s1995_s11 = scalar_lea.hbm %s2553_s3, 1024 }
  0x16   :  { %p1996_p8 = scmp.ne.s32.totalorder %s2553_s3, %s1995_s11  ;;  %p1999_p9 = scmp.lt.u32.totalorder %s1995_s11, %s2553_s3 }
  0x18   :  { %p2001_p10 = pnand %p1999_p9, %p1996_p8 }
  0x1a   :  { %2004 = shalt.err (!%p2001_p10)
}
  0x1b   :  { %s2005_s16 = scalar_lea.vmem %s2161_s21, 1024  ;;  %p2010_p12 = scmp.lt.s32.totalorder %s2161_s21, %s2161_s21 }
  0x1c   :  { %p2006_p11 = scmp.ne.s32.totalorder %s2161_s21, %s2005_s16  ;;  %p2011_p13 = scmp.lt.s32.totalorder %s2005_s16, %s2005_s16 }
  0x1e   :  { %p2012_p0 = por %p2011_p13, %p2010_p12 }
  0x20   :  { %p2013_p1 = pnand %p2012_p0, %p2006_p11 }
  0x22   :  { %2016 = shalt.err (!%p2013_p1)
}
  0x23   :  { %s2117_s1 = smov 64   ;;  %s2118_s17 = smov 4  }
  0x24   :  { %73 = dma.hbm_to_vmem [thread:$0]  %s2553_s3, 1024, %s2161_s21, [#allocation10], %s2117_s1, %s2117_s1, %s2118_s17  }
  0x25   :  { %s2119_s20 = smov [#allocation3]   ;;  %s2120_s23 = smov [#allocation8]  }
  0x26   :  { %s23_s22 = sshll.u32 %s2119_s20, 4  ;;  %s55_s24 = sshll.u32 %s2120_s23, 4  ;;  %s24_s22 = int_to_ptr.vmem [resolvable:$true] %s23_s22  ;;  %s2198_s24 = int_to_ptr.vmem [resolvable:$true] %s55_s24 }
  0x27   :  { %s2017_s27 = scalar_lea.hbm %s2550_s0, 256 }
  0x28   :  { %p2018_p2 = scmp.ne.s32.totalorder %s2550_s0, %s2017_s27  ;;  %p2021_p3 = scmp.lt.u32.totalorder %s2017_s27, %s2550_s0 }
  0x2a   :  { %p2023_p4 = pnand %p2021_p3, %p2018_p2 }
  0x2c   :  { %2026 = shalt.err (!%p2023_p4)
}
  0x2d   :  { %s2027_s3 = scalar_lea.vmem %s24_s22, 256  ;;  %p2032_p6 = scmp.lt.s32.totalorder %s24_s22, %s24_s22 }
  0x2e   :  { %p2028_p5 = scmp.ne.s32.totalorder %s24_s22, %s2027_s3  ;;  %p2033_p7 = scmp.lt.s32.totalorder %s2027_s3, %s2027_s3 }
  0x30   :  { %p2034_p8 = por %p2033_p7, %p2032_p6 }
  0x32   :  { %p2035_p9 = pnand %p2034_p8, %p2028_p5 }
  0x34   :  { %2038 = shalt.err (!%p2035_p9)
}
  0x35   :  { %29 = dma.hbm_to_vmem [thread:$0]  %s2550_s0, 256, %s24_s22, [#allocation4], %s2115_s30, %s2115_s30, %s2116_s6  }
  0x36   :  { %s2039_s12 = scalar_lea.hbm %s2552_s2, 256 }
  0x37   :  { %p2040_p10 = scmp.ne.s32.totalorder %s2552_s2, %s2039_s12  ;;  %p2043_p11 = scmp.lt.u32.totalorder %s2039_s12, %s2552_s2 }
  0x39   :  { %p2045_p12 = pnand %p2043_p11, %p2040_p10 }
  0x3b   :  { %2048 = shalt.err (!%p2045_p12)
}
  0x3c   :  { %s2049_s18 = scalar_lea.vmem %s2198_s24, 256  ;;  %p2054_p0 = scmp.lt.s32.totalorder %s2198_s24, %s2198_s24 }
  0x3d   :  { %p2050_p13 = scmp.ne.s32.totalorder %s2198_s24, %s2049_s18  ;;  %p2055_p1 = scmp.lt.s32.totalorder %s2049_s18, %s2049_s18 }
  0x3f   :  { %p2056_p2 = por %p2055_p1, %p2054_p0 }
  0x41   :  { %p2057_p3 = pnand %p2056_p2, %p2050_p13 }
  0x43   :  { %2060 = shalt.err (!%p2057_p3)
}
  0x44   :  { %61 = dma.hbm_to_vmem [thread:$0]  %s2552_s2, 256, %s2198_s24, [#allocation7], %s2115_s30, %s2115_s30, %s2116_s6  }
  0x45   :  { %s2121_s20 = smov [#allocation11]   ;;  %s2061_s26 = scalar_lea.hbm %s2554_s4, 1024 }
  0x46   :  { %s79_s22 = sshll.u32 %s2121_s20, 4  ;;  %p2062_p4 = scmp.ne.s32.totalorder %s2554_s4, %s2061_s26  ;;  %s80_s22 = int_to_ptr.vmem [resolvable:$true] %s79_s22 }
  0x47   :  { %p2065_p5 = scmp.lt.u32.totalorder %s2061_s26, %s2554_s4 }
  0x49   :  { %p2067_p6 = pnand %p2065_p5, %p2062_p4 }
  0x4b   :  { %2070 = shalt.err (!%p2067_p6)
}
  0x4c   :  { %s2071_s8 = scalar_lea.vmem %s80_s22, 1024  ;;  %p2076_p8 = scmp.lt.s32.totalorder %s80_s22, %s80_s22 }
  0x4d   :  { %p2072_p7 = scmp.ne.s32.totalorder %s80_s22, %s2071_s8  ;;  %p2077_p9 = scmp.lt.s32.totalorder %s2071_s8, %s2071_s8 }
  0x4f   :  { %p2078_p10 = por %p2077_p9, %p2076_p8 }
  0x51   :  { %p2079_p11 = pnand %p2078_p10, %p2072_p7 }
  0x53   :  { %2082 = shalt.err (!%p2079_p11)
}
  0x54   :  { %85 = dma.hbm_to_vmem [thread:$0]  %s2554_s4, 1024, %s80_s22, [#allocation10], %s2117_s1, %s2117_s1, %s2118_s17  }
  0x55   :  { %2105 = dma.done.wait [#allocation4], 256  }
  0x56   :  { %2106 = vsyncadd [#allocation4], 4294967040 }
  0x57   :  { %2107 = dma.done.wait [#allocation7], 512  }
  0x58   :  { %2108 = vsyncadd [#allocation7], 4294966784 }
  0x59   :  { %2109 = dma.done.wait [#allocation10], 2048  }
  0x5a   :  { %2110 = vsyncadd [#allocation10], 4294965248  ;;  %v2122_v0 = vmov 0   ;;  %v2123_v1 = vmov 0.0   ;;  %v249_v2 = vld [vmem:[#allocation6] sm:$0xff]  ;;  %v147_v3 = vld [vmem:[#allocation3] sm:$0xff]  ;;  %v145_v29 = vlaneseq }
  0x5b   :  { %1923 = vset.pattern.permute.xlu1 %v2122_v0  ;;  %1922 = vset.pattern.permute.xlu0 %v2122_v0  ;;  %112 = vst [vmem:[#allocation2] sm:$0x1] %v2123_v1  ;;  %v250_v4 = vld [vmem:[#allocation6 + $0x8] sm:$0xff]  ;;  %v148_v5 = vld [vmem:[#allocation3 + $0x8] sm:$0xff]  ;;  %v2255_v6 = vld [vmem:[#allocation11] sm:$0xff]   ;;  %vm2124_vm0 = vmmov 0  }
  0x5c   :  { %1478 = vmatprep.subr.bf16.mxu1 %v2123_v1  ;;  %1458 = vmatprep.subr.bf16.mxu0 %v2123_v1  ;;  %v1934_v7 = vld [vmem:[#allocation9] sm:$0xff]   ;;  %v2257_v8 = vld [vmem:[#allocation8 + $0x8] sm:$0xff]  ;;  %v2260_v9 = vld [vmem:[#allocation11 + $0x8] sm:$0xff]   ;;  %v2125_v15 = vmov 1   ;;  %v2126_v18 = vmov 2   ;;  %v2127_v21 = vmov 3  }
  0x5d   :  { %252 = vperm.xlu1 %1923, %v249_v2   ;;  %150 = vperm.xlu0 %1922, %v147_v3   ;;  %v2262_v10 = vld [vmem:[#allocation8] sm:$0xff]  ;;  %v1936_v11 = vld [vmem:[#allocation9 + $0x8] sm:$0xff]   ;;  %v2278_v14 = vld [vmem:[#allocation11 + $0x18] sm:$0xff]   ;;  %v2128_v27 = vmov 4   ;;  %v2129_v28 = vmov 1.0|1.0  }
  0x5e   :  { %1479 = vmatpush3.bf16.msra.mxu1 %v2255_v6  ;;  %1459 = vmatpush3.bf16.msra.mxu0 %v1934_v7  ;;  %v2269_v12 = vld [vmem:[#allocation11 + $0x10] sm:$0xff]   ;;  %v1940_v16 = vld [vmem:[#allocation9 + $0x18] sm:$0xff]   ;;  %v2285_v17 = vld [vmem:[#allocation11 + $0x20] sm:$0xff]   ;;  %v2315_v32 = vand.u32 127, %v145_v29  ;;  %s2130_s4 = smov [#allocation12]  }
  0x5f   :  { %1480 = vmatprep.subr.bf16.mxu1 %v2123_v1  ;;  %1460 = vmatprep.subr.bf16.mxu0 %v2123_v1  ;;  %v1938_v13 = vld [vmem:[#allocation9 + $0x10] sm:$0xff]   ;;  %v1942_v19 = vld [vmem:[#allocation9 + $0x20] sm:$0xff]   ;;  %v2291_v20 = vld [vmem:[#allocation11 + $0x28] sm:$0xff]   ;;  %s1246_s6 = sshll.u32 %s2130_s4, 4  ;;  %s1247_s6 = int_to_ptr.vmem [resolvable:$true] %s1246_s6 }
  0x60   :  { %1474 = vmatprep.mubr.msk.bf16.mxu0 %vm2124_vm0, %v2123_v1  ;;  %1494 = vmatprep.mubr.msk.bf16.mxu1 %vm2124_vm0, %v2123_v1  ;;  %v1944_v22 = vld [vmem:[#allocation9 + $0x28] sm:$0xff]   ;;  %v2296_v23 = vld [vmem:[#allocation11 + $0x30] sm:$0xff]   ;;  %v2302_v25 = vld [vmem:[#allocation11 + $0x38] sm:$0xff]   ;;  %s2083_s1 = scalar_lea.vmem %s1247_s6, 16  ;;  %s2087_s17 = scalar_lea.vmem %s1247_s6, 32 }
  0x61   :  { %255 = vperm.xlu1 %1923, %v250_v4   ;;  %153 = vperm.xlu0 %1922, %v148_v5   ;;  %v1946_v24 = vld [vmem:[#allocation9 + $0x30] sm:$0xff]   ;;  %v1948_v26 = vld [vmem:[#allocation9 + $0x38] sm:$0xff]   ;;  %p2084_p12 = scmp.ne.s32.totalorder %s1247_s6, %s2083_s1  ;;  %p2088_p13 = scmp.lt.s32.totalorder %s1247_s6, %s1247_s6 }
  0x62   :  { %1481 = vmatpush3.bf16.msra.mxu1 %v2260_v9  ;;  %1461 = vmatpush3.bf16.msra.mxu0 %v1936_v11  ;;  %p2089_p0 = scmp.lt.s32.totalorder %s2087_s17, %s2083_s1 }
  0x63   :  { %1482 = vmatprep.subr.bf16.mxu1 %v2123_v1  ;;  %1462 = vmatprep.subr.bf16.mxu0 %v2123_v1 }
  0x64   :  { %p2090_p1 = por %p2089_p0, %p2088_p13 }
  0x65   :  { %452 = vperm.xlu1 %1923, %v2257_v8   ;;  %449 = vperm.xlu0 %1922, %v2262_v10  }
  0x66   :  { %1483 = vmatpush3.bf16.msra.mxu1 %v2269_v12  ;;  %1463 = vmatpush3.bf16.msra.mxu0 %v1938_v13  ;;  %p2091_p2 = pnand %p2090_p1, %p2084_p12 }
  0x67   :  { %1484 = vmatprep.subr.bf16.mxu1 %v2123_v1  ;;  %1464 = vmatprep.subr.bf16.mxu0 %v2123_v1 }
  0x69   :  { %1925 = vset.pattern.permute.xlu1 %v2125_v15  ;;  %1924 = vset.pattern.permute.xlu0 %v2125_v15 }
  0x6a   :  { %603 = vperm.xlu1 %1925, %v2257_v8   ;;  %600 = vperm.xlu0 %1924, %v2262_v10  }
  0x6b   :  { %1485 = vmatpush3.bf16.msra.mxu1 %v2278_v14  ;;  %1465 = vmatpush3.bf16.msra.mxu0 %v1940_v16 }
  0x6c   :  { %1486 = vmatprep.subr.bf16.mxu1 %v2123_v1  ;;  %1466 = vmatprep.subr.bf16.mxu0 %v2123_v1 }
  0x6e   :  { %1926 = vset.pattern.permute.xlu1 %v2126_v18  ;;  %1927 = vset.pattern.permute.xlu0 %v2126_v18 }
  0x6f   :  { %751 = vperm.xlu1 %1926, %v2262_v10   ;;  %754 = vperm.xlu0 %1927, %v2257_v8  }
  0x70   :  { %1487 = vmatpush3.bf16.msra.mxu1 %v2285_v17  ;;  %1467 = vmatpush3.bf16.msra.mxu0 %v1942_v19 }
  0x71   :  { %1488 = vmatprep.subr.bf16.mxu1 %v2123_v1  ;;  %1468 = vmatprep.subr.bf16.mxu0 %v2123_v1 }
  0x73   :  { %1928 = vset.pattern.permute.xlu1 %v2127_v21  ;;  %1929 = vset.pattern.permute.xlu0 %v2128_v27 }
  0x74   :  { %1489 = vmatpush3.bf16.msra.mxu1 %v2291_v20  ;;  %902 = vperm.xlu1 %1928, %v2262_v10  }
  0x75   :  { %1490 = vmatprep.subr.bf16.mxu1 %v2123_v1  ;;  %1469 = vmatpush3.bf16.msra.mxu0 %v1944_v22 }
  0x76   :  { %1470 = vmatprep.subr.bf16.mxu0 %v2123_v1  ;;  %1053 = vperm.xlu0 %1929, %v2262_v10  }
  0x78   :  { %1491 = vmatpush3.bf16.msra.mxu1 %v2296_v23  ;;  %905 = vperm.xlu1 %1928, %v2257_v8  }
  0x79   :  { %1492 = vmatprep.subr.bf16.mxu1 %v2123_v1  ;;  %1471 = vmatpush3.bf16.msra.mxu0 %v1946_v24 }
  0x7a   :  { %1472 = vmatprep.subr.bf16.mxu0 %v2123_v1  ;;  %1932 = vset.pattern.permute.xlu0 %v2122_v0 }
  0x7c   :  { %1493 = vmatpush3.bf16.msra.mxu1 %v2302_v25  ;;  %1930 = vset.pattern.permute.xlu1 %v2128_v27 }
  0x7d   :  { %1533 = vmatprep.subr.bf16.mxu1 %v2123_v1  ;;  %1056 = vperm.xlu1 %1930, %v2257_v8  }
  0x7e   :  { %1473 = vmatpush3.bf16.msra.mxu0 %v1948_v26 }
  0x7f   :  { %1808 = vmatprep.subr.bf16.mxu0 %v2129_v28 }
  0x81   :  { %1931 = vset.pattern.permute.xlu1 %v2122_v0 }
  0xdc   :  { %v253_v30 = vpop.permute.xlu1 %252  ;;  %v151_v31 = vpop.permute.xlu0 %150 }
  0xdd   :  { %vm257_vm1 = vcmp.eq.s32.totalorder %v2315_v32, %v253_v30  ;;  %vm155_vm4 = vcmp.eq.s32.totalorder %v2315_v32, %v151_v31 }
  0xe0   :  { %v256_v33 = vpop.permute.xlu1 %255  ;;  %v154_v34 = vpop.permute.xlu0 %153 }
  0xe1   :  { %vm258_vm2 = vcmp.eq.s32.totalorder %v2315_v32, %v256_v33  ;;  %vm156_vm3 = vcmp.eq.s32.totalorder %v2315_v32, %v154_v34 }
  0xe2   :  { %vm1275_vm5 = vmpackc.low %vm258_vm2, %vm257_vm1 }
  0xe3   :  { %vm1265_vm6 = vmpackc.low %vm156_vm3, %vm155_vm4  ;;  %1495 = vmatmul.mubr.msk.bf16.vlgmr.msra.gmra.mrb[0].mxu1 %vm1275_vm5, %v2129_v28 }
  0xe4   :  { %1475 = vmatmul.mubr.msk.bf16.vlgmr.msra.gmra.mrb[0].mxu0 %vm1265_vm6, %v2129_v28  ;;  %1534 = vmatpush3.bf16.msra.mxu1 %v2255_v6  ;;  %v453_v35 = vpop.permute.xlu1 %452  ;;  %v450_v36 = vpop.permute.xlu0 %449 }
  0xe5   :  { %1535 = vmatprep.subr.bf16.mxu1 %v2123_v1  ;;  %1549 = vmatprep.mubr.msk.bf16.mxu1 %vm2124_vm0, %v2123_v1  ;;  %vm455_vm7 = vcmp.eq.s32.totalorder %v2315_v32, %v453_v35  ;;  %vm454_vm8 = vcmp.eq.s32.totalorder %v2315_v32, %v450_v36 }
  0xe6   :  { %1809 = vmatpush3.bf16.msra.mxu0 %v2129_v28  ;;  %vm1277_vm9 = vmpackc.low %vm455_vm7, %vm454_vm8 }
  0xe7   :  { %1810 = vmatprep.subr.bf16.mxu0 %v2129_v28 }
  0xe8   :  { %1536 = vmatpush3.bf16.msra.mxu1 %v2260_v9 }
  0xe9   :  { %1537 = vmatprep.subr.bf16.mxu1 %v2123_v1  ;;  %v604_v37 = vpop.permute.xlu1 %603  ;;  %v601_v38 = vpop.permute.xlu0 %600 }
  0xea   :  { %1811 = vmatpush3.bf16.msra.mxu0 %v2129_v28  ;;  %vm606_vm10 = vcmp.eq.s32.totalorder %v2315_v32, %v604_v37  ;;  %vm605_vm11 = vcmp.eq.s32.totalorder %v2315_v32, %v601_v38 }
  0xeb   :  { %1812 = vmatprep.subr.bf16.mxu0 %v2129_v28  ;;  %vm1279_vm12 = vmpackc.low %vm606_vm10, %vm605_vm11 }
  0xec   :  { %1538 = vmatpush3.bf16.msra.mxu1 %v2269_v12 }
  0xed   :  { %1539 = vmatprep.subr.bf16.mxu1 %v2123_v1 }
  0xee   :  { %1813 = vmatpush3.bf16.msra.mxu0 %v2129_v28  ;;  %v752_v39 = vpop.permute.xlu1 %751  ;;  %v755_v40 = vpop.permute.xlu0 %754 }
  0xef   :  { %1814 = vmatprep.subr.bf16.mxu0 %v2129_v28  ;;  %vm756_vm13 = vcmp.eq.s32.totalorder %v2315_v32, %v752_v39  ;;  %vm757_vm14 = vcmp.eq.s32.totalorder %v2315_v32, %v755_v40 }
  0xf0   :  { %1540 = vmatpush3.bf16.msra.mxu1 %v2278_v14  ;;  %vm1281_vm15 = vmpackc.low %vm757_vm14, %vm756_vm13 }
  0xf1   :  { %1541 = vmatprep.subr.bf16.mxu1 %v2123_v1 }
  0xf2   :  { %1815 = vmatpush3.bf16.msra.mxu0 %v2129_v28 }
  0xf3   :  { %1816 = vmatprep.subr.bf16.mxu0 %v2129_v28  ;;  %v903_v41 = vpop.permute.xlu1 %902 }
  0xf4   :  { %1542 = vmatpush3.bf16.msra.mxu1 %v2285_v17  ;;  %vm907_vm1 = vcmp.eq.s32.totalorder %v2315_v32, %v903_v41 }
  0xf5   :  { %1543 = vmatprep.subr.bf16.mxu1 %v2123_v1  ;;  %v1054_v44 = vpop.permute.xlu0 %1053 }
  0xf6   :  { %1817 = vmatpush3.bf16.msra.mxu0 %v2129_v28  ;;  %vm1058_vm4 = vcmp.eq.s32.totalorder %v2315_v32, %v1054_v44 }
  0xf7   :  { %1818 = vmatprep.subr.bf16.mxu0 %v2129_v28  ;;  %v906_v42 = vpop.permute.xlu1 %905 }
  0xf8   :  { %1544 = vmatpush3.bf16.msra.mxu1 %v2291_v20  ;;  %vm908_vm2 = vcmp.eq.s32.totalorder %v2315_v32, %v906_v42 }
  0xf9   :  { %1545 = vmatprep.subr.bf16.mxu1 %v2123_v1  ;;  %vm1283_vm3 = vmpackc.low %vm908_vm2, %vm907_vm1 }
  0xfa   :  { %1819 = vmatpush3.bf16.msra.mxu0 %v2129_v28 }
  0xfb   :  { %1820 = vmatprep.subr.bf16.mxu0 %v2129_v28 }
  0xfc   :  { %1546 = vmatpush3.bf16.msra.mxu1 %v2296_v23  ;;  %v1057_v43 = vpop.permute.xlu1 %1056 }
  0xfd   :  { %1547 = vmatprep.subr.bf16.mxu1 %v2123_v1 }
  0xfe   :  { %1821 = vmatpush3.bf16.msra.mxu0 %v2129_v28 }
  0xff   :  { %1822 = vmatprep.subr.bf16.mxu0 %v2129_v28 }
 0x100   :  { %1548 = vmatpush3.bf16.msra.mxu1 %v2302_v25 }
 0x101   :  { %1588 = vmatprep.subr.bf16.mxu1 %v2123_v1 }
 0x102   :  { %1823 = vmatpush3.bf16.msra.mxu0 %v2129_v28 }
 0x103   :  { %1550 = vmatmul.mubr.msk.bf16.vlgmr.msra.gmra.mrb[4].mxu1 %vm1277_vm9, %v2129_v28  ;;  %1824 = vmatprep.subr.bf16.mxu0 %v2129_v28 }
 0x104   :  { %1589 = vmatpush3.bf16.msra.mxu1 %v2255_v6  ;;  %1604 = vmatprep.mubr.msk.bf16.mxu1 %vm2124_vm0, %v2123_v1 }
 0x105   :  { %1590 = vmatprep.subr.bf16.mxu1 %v2123_v1 }
 0x108   :  { %1591 = vmatpush3.bf16.msra.mxu1 %v2260_v9 }
 0x109   :  { %1592 = vmatprep.subr.bf16.mxu1 %v2123_v1 }
 0x10c   :  { %1593 = vmatpush3.bf16.msra.mxu1 %v2269_v12 }
 0x10d   :  { %1594 = vmatprep.subr.bf16.mxu1 %v2123_v1 }
 0x110   :  { %1595 = vmatpush3.bf16.msra.mxu1 %v2278_v14 }
 0x111   :  { %1596 = vmatprep.subr.bf16.mxu1 %v2123_v1 }
 0x114   :  { %1597 = vmatpush3.bf16.msra.mxu1 %v2285_v17 }
 0x115   :  { %1598 = vmatprep.subr.bf16.mxu1 %v2123_v1 }
 0x118   :  { %1599 = vmatpush3.bf16.msra.mxu1 %v2291_v20 }
 0x119   :  { %1600 = vmatprep.subr.bf16.mxu1 %v2123_v1 }
 0x11c   :  { %1601 = vmatpush3.bf16.msra.mxu1 %v2296_v23 }
 0x11d   :  { %1602 = vmatprep.subr.bf16.mxu1 %v2123_v1 }
 0x120   :  { %1603 = vmatpush3.bf16.msra.mxu1 %v2302_v25 }
 0x121   :  { %1643 = vmatprep.subr.bf16.mxu1 %v2123_v1 }
 0x123   :  { %1605 = vmatmul.mubr.msk.bf16.vlgmr.msra.gmra.mrb[8].mxu1 %vm1279_vm12, %v2129_v28 }
 0x124   :  { %1644 = vmatpush3.bf16.msra.mxu1 %v2255_v6  ;;  %1659 = vmatprep.mubr.msk.bf16.mxu1 %vm2124_vm0, %v2123_v1 }
 0x125   :  { %1645 = vmatprep.subr.bf16.mxu1 %v2123_v1 }
 0x128   :  { %1646 = vmatpush3.bf16.msra.mxu1 %v2260_v9 }
 0x129   :  { %1647 = vmatprep.subr.bf16.mxu1 %v2123_v1 }
 0x12c   :  { %1648 = vmatpush3.bf16.msra.mxu1 %v2269_v12 }
 0x12d   :  { %1649 = vmatprep.subr.bf16.mxu1 %v2123_v1 }
 0x130   :  { %1650 = vmatpush3.bf16.msra.mxu1 %v2278_v14 }
 0x131   :  { %1651 = vmatprep.subr.bf16.mxu1 %v2123_v1 }
 0x134   :  { %1652 = vmatpush3.bf16.msra.mxu1 %v2285_v17 }
 0x135   :  { %1653 = vmatprep.subr.bf16.mxu1 %v2123_v1 }
 0x138   :  { %1654 = vmatpush3.bf16.msra.mxu1 %v2291_v20 }
 0x139   :  { %1655 = vmatprep.subr.bf16.mxu1 %v2123_v1 }
 0x13c   :  { %1656 = vmatpush3.bf16.msra.mxu1 %v2296_v23 }
 0x13d   :  { %1657 = vmatprep.subr.bf16.mxu1 %v2123_v1 }
 0x140   :  { %1658 = vmatpush3.bf16.msra.mxu1 %v2302_v25 }
 0x141   :  { %1698 = vmatprep.subr.bf16.mxu1 %v2123_v1 }
 0x143   :  { %1660 = vmatmul.mubr.msk.bf16.vlgmr.msra.gmra.mrb[12].mxu1 %vm1281_vm15, %v2129_v28 }
 0x144   :  { %1699 = vmatpush3.bf16.msra.mxu1 %v2255_v6  ;;  %1714 = vmatprep.mubr.msk.bf16.mxu1 %vm2124_vm0, %v2123_v1 }
 0x145   :  { %1700 = vmatprep.subr.bf16.mxu1 %v2123_v1 }
 0x148   :  { %1701 = vmatpush3.bf16.msra.mxu1 %v2260_v9 }
 0x149   :  { %1702 = vmatprep.subr.bf16.mxu1 %v2123_v1 }
 0x14c   :  { %1703 = vmatpush3.bf16.msra.mxu1 %v2269_v12 }
 0x14d   :  { %1704 = vmatprep.subr.bf16.mxu1 %v2123_v1 }
 0x150   :  { %1705 = vmatpush3.bf16.msra.mxu1 %v2278_v14 }
 0x151   :  { %1706 = vmatprep.subr.bf16.mxu1 %v2123_v1 }
 0x154   :  { %1707 = vmatpush3.bf16.msra.mxu1 %v2285_v17 }
 0x155   :  { %1708 = vmatprep.subr.bf16.mxu1 %v2123_v1 }
 0x158   :  { %1709 = vmatpush3.bf16.msra.mxu1 %v2291_v20 }
 0x159   :  { %1710 = vmatprep.subr.bf16.mxu1 %v2123_v1 }
 0x15c   :  { %1711 = vmatpush3.bf16.msra.mxu1 %v2296_v23 }
 0x15d   :  { %1712 = vmatprep.subr.bf16.mxu1 %v2123_v1 }
 0x160   :  { %1713 = vmatpush3.bf16.msra.mxu1 %v2302_v25 }
 0x161   :  { %1753 = vmatprep.subr.bf16.mxu1 %v2123_v1 }
 0x163   :  { %1715 = vmatmul.mubr.msk.bf16.vlgmr.msra.gmra.mrb[16].mxu1 %vm1283_vm3, %v2129_v28 }
 0x164   :  { %1754 = vmatpush3.bf16.msra.mxu1 %v2255_v6  ;;  %1769 = vmatprep.mubr.msk.bf16.mxu1 %vm2124_vm0, %v2123_v1  ;;  %vm1059_vm0 = vcmp.eq.s32.totalorder %v2315_v32, %v1057_v43 }
 0x165   :  { %1755 = vmatprep.subr.bf16.mxu1 %v2123_v1  ;;  %vm1285_vm5 = vmpackc.low %vm1059_vm0, %vm1058_vm4 }
 0x168   :  { %1756 = vmatpush3.bf16.msra.mxu1 %v2260_v9 }
 0x169   :  { %1757 = vmatprep.subr.bf16.mxu1 %v2123_v1 }
 0x16c   :  { %1758 = vmatpush3.bf16.msra.mxu1 %v2269_v12 }
 0x16d   :  { %1759 = vmatprep.subr.bf16.mxu1 %v2123_v1 }
 0x170   :  { %1760 = vmatpush3.bf16.msra.mxu1 %v2278_v14 }
 0x171   :  { %1761 = vmatprep.subr.bf16.mxu1 %v2123_v1 }
 0x174   :  { %1762 = vmatpush3.bf16.msra.mxu1 %v2285_v17 }
 0x175   :  { %1763 = vmatprep.subr.bf16.mxu1 %v2123_v1 }
 0x178   :  { %1764 = vmatpush3.bf16.msra.mxu1 %v2291_v20 }
 0x179   :  { %1765 = vmatprep.subr.bf16.mxu1 %v2123_v1 }
 0x17c   :  { %1766 = vmatpush3.bf16.msra.mxu1 %v2296_v23 }
 0x17d   :  { %1767 = vmatprep.subr.bf16.mxu1 %v2123_v1 }
 0x180   :  { %1768 = vmatpush3.bf16.msra.mxu1 %v2302_v25 }
 0x183   :  { %1770 = vmatmul.mubr.msk.bf16.vlgmr.msra.gmra.mrb[20].mxu1 %vm1285_vm5, %v2129_v28 }
 0x1b6   :  { %v344_v45 = vpop.f32.mrb[0].mxu1 }
 0x1b7   :  { %v2443_v46 = vpop.f32.mrb[0].mxu0  ;;  %v1496_v47 = vpop.f32.mrb[1].mxu1 }
 0x1b8   :  { %v351_v48 = vmul.f32 %v344_v45, %v2443_v46  ;;  %v1476_v49 = vpop.f32.mrb[1].mxu0  ;;  %v347_v50 = vpop.f32.mrb[2].mxu1 }
 0x1b9   :  { %v2446_v51 = vpop.f32.mrb[2].mxu0  ;;  %v1497_v52 = vpop.f32.mrb[3].mxu1 }
 0x1ba   :  { %v352_v53 = vmul.f32 %v347_v50, %v2446_v51  ;;  %v1477_v54 = vpop.f32.mrb[3].mxu0  ;;  %1530 = vmatprep.mubr.f32.mxu0 %v351_v48 }
 0x1bc   :  { %1531 = vmatmul.mubr.f32.vlgmr.msra.gmra.mrb[4].mxu0 %v352_v53 }
 0x1bd   :  { %1825 = vmatpush3.bf16.msra.mxu0 %v2129_v28 }
 0x1be   :  { %1826 = vmatprep.subr.bf16.mxu0 %v2129_v28 }
 0x1c1   :  { %1827 = vmatpush3.bf16.msra.mxu0 %v2129_v28 }
 0x1c2   :  { %1828 = vmatprep.subr.bf16.mxu0 %v2129_v28 }
 0x1c5   :  { %1829 = vmatpush3.bf16.msra.mxu0 %v2129_v28 }
 0x1c6   :  { %1830 = vmatprep.subr.bf16.mxu0 %v2129_v28 }
 0x1c9   :  { %1831 = vmatpush3.bf16.msra.mxu0 %v2129_v28 }
 0x1ca   :  { %1832 = vmatprep.subr.bf16.mxu0 %v2129_v28 }
 0x1cd   :  { %1833 = vmatpush3.bf16.msra.mxu0 %v2129_v28 }
 0x1ce   :  { %1834 = vmatprep.subr.bf16.mxu0 %v2129_v28 }
 0x1d1   :  { %1835 = vmatpush3.bf16.msra.mxu0 %v2129_v28 }
 0x1d2   :  { %1836 = vmatprep.subr.bf16.mxu0 %v2129_v28 }
 0x1d5   :  { %1837 = vmatpush3.bf16.msra.mxu0 %v2129_v28 }
 0x1d6   :  { %v493_v55 = vpop.f32.mrb[4].mxu1  ;;  %1838 = vmatprep.subr.bf16.mxu0 %v2129_v28 }
 0x1d7   :  { %v500_v56 = vmul.f32 %v493_v55, %v2443_v46  ;;  %v1551_v57 = vpop.f32.mrb[5].mxu1 }
 0x1d8   :  { %v496_v58 = vpop.f32.mrb[6].mxu1 }
 0x1d9   :  { %v501_v59 = vmul.f32 %v496_v58, %v2446_v51  ;;  %1839 = vmatpush3.bf16.msra.mxu0 %v2129_v28  ;;  %v1552_v60 = vpop.f32.mrb[7].mxu1  ;;  %1585 = vmatprep.mubr.f32.mxu0 %v500_v56 }
 0x1da   :  { %1840 = vmatprep.subr.bf16.mxu0 %v2129_v28 }
 0x1dc   :  { %1586 = vmatmul.mubr.f32.vlgmr.msra.gmra.mrb[6].mxu0 %v501_v59 }
 0x1dd   :  { %1841 = vmatpush3.bf16.msra.mxu0 %v2129_v28 }
 0x1de   :  { %1842 = vmatprep.subr.bf16.mxu0 %v2129_v28 }
 0x1e1   :  { %1843 = vmatpush3.bf16.msra.mxu0 %v2129_v28 }
 0x1e2   :  { %1844 = vmatprep.subr.bf16.mxu0 %v2129_v28 }
 0x1e5   :  { %1845 = vmatpush3.bf16.msra.mxu0 %v2129_v28 }
 0x1e6   :  { %1846 = vmatprep.subr.bf16.mxu0 %v2129_v28 }
 0x1e9   :  { %1847 = vmatpush3.bf16.msra.mxu0 %v2129_v28 }
 0x1ea   :  { %1848 = vmatprep.subr.bf16.mxu0 %v2129_v28 }
 0x1ed   :  { %1849 = vmatpush3.bf16.msra.mxu0 %v2129_v28 }
 0x1ee   :  { %1850 = vmatprep.subr.bf16.mxu0 %v2129_v28 }
 0x1f1   :  { %1851 = vmatpush3.bf16.msra.mxu0 %v2129_v28 }
 0x1f2   :  { %1852 = vmatprep.subr.bf16.mxu0 %v2129_v28 }
 0x1f5   :  { %1853 = vmatpush3.bf16.msra.mxu0 %v2129_v28 }
 0x1f6   :  { %v644_v61 = vpop.f32.mrb[8].mxu1  ;;  %1854 = vmatprep.subr.bf16.mxu0 %v2129_v28 }
 0x1f7   :  { %v651_v62 = vmul.f32 %v644_v61, %v2443_v46  ;;  %v1606_v63 = vpop.f32.mrb[9].mxu1 }
 0x1f8   :  { %v647_v0 = vpop.f32.mrb[10].mxu1 }
 0x1f9   :  { %v652_v1 = vmul.f32 %v647_v0, %v2446_v51  ;;  %1855 = vmatpush3.bf16.msra.mxu0 %v2129_v28  ;;  %v1607_v2 = vpop.f32.mrb[11].mxu1  ;;  %1640 = vmatprep.mubr.f32.mxu0 %v651_v62 }
 0x1fa   :  { %1856 = vmatprep.subr.bf16.mxu0 %v2129_v28 }
 0x1fc   :  { %1641 = vmatmul.mubr.f32.vlgmr.msra.gmra.mrb[8].mxu0 %v652_v1 }
 0x1fd   :  { %1857 = vmatpush3.bf16.msra.mxu0 %v2129_v28 }
 0x1fe   :  { %1858 = vmatprep.subr.bf16.mxu0 %v2129_v28 }
 0x201   :  { %1859 = vmatpush3.bf16.msra.mxu0 %v2129_v28 }
 0x202   :  { %1860 = vmatprep.subr.bf16.mxu0 %v2129_v28 }
 0x205   :  { %1861 = vmatpush3.bf16.msra.mxu0 %v2129_v28 }
 0x206   :  { %1862 = vmatprep.subr.bf16.mxu0 %v2129_v28 }
 0x209   :  { %1863 = vmatpush3.bf16.msra.mxu0 %v2129_v28 }
 0x20a   :  { %1864 = vmatprep.subr.bf16.mxu0 %v2129_v28 }
 0x20d   :  { %1865 = vmatpush3.bf16.msra.mxu0 %v2129_v28 }
 0x20e   :  { %1866 = vmatprep.subr.bf16.mxu0 %v2129_v28 }
 0x211   :  { %1867 = vmatpush3.bf16.msra.mxu0 %v2129_v28 }
 0x212   :  { %1868 = vmatprep.subr.bf16.mxu0 %v2129_v28 }
 0x215   :  { %1869 = vmatpush3.bf16.msra.mxu0 %v2129_v28 }
 0x216   :  { %v795_v3 = vpop.f32.mrb[12].mxu1  ;;  %1870 = vmatprep.subr.bf16.mxu0 %v2129_v28 }
 0x217   :  { %v802_v4 = vmul.f32 %v795_v3, %v2443_v46  ;;  %v1661_v5 = vpop.f32.mrb[13].mxu1 }
 0x218   :  { %v798_v6 = vpop.f32.mrb[14].mxu1 }
 0x219   :  { %v803_v7 = vmul.f32 %v798_v6, %v2446_v51  ;;  %1871 = vmatpush3.bf16.msra.mxu0 %v2129_v28  ;;  %v1662_v8 = vpop.f32.mrb[15].mxu1  ;;  %1695 = vmatprep.mubr.f32.mxu0 %v802_v4 }
 0x21a   :  { %1872 = vmatprep.subr.bf16.mxu0 %v2129_v28 }
 0x21c   :  { %1696 = vmatmul.mubr.f32.vlgmr.msra.gmra.mrb[10].mxu0 %v803_v7 }
 0x21d   :  { %1873 = vmatpush3.bf16.msra.mxu0 %v2129_v28 }
 0x21e   :  { %1874 = vmatprep.subr.bf16.mxu0 %v2129_v28 }
 0x221   :  { %1875 = vmatpush3.bf16.msra.mxu0 %v2129_v28 }
 0x222   :  { %1876 = vmatprep.subr.bf16.mxu0 %v2129_v28 }
 0x225   :  { %1877 = vmatpush3.bf16.msra.mxu0 %v2129_v28 }
 0x226   :  { %1878 = vmatprep.subr.bf16.mxu0 %v2129_v28 }
 0x229   :  { %1879 = vmatpush3.bf16.msra.mxu0 %v2129_v28 }
 0x22a   :  { %1880 = vmatprep.subr.bf16.mxu0 %v2129_v28 }
 0x22d   :  { %1881 = vmatpush3.bf16.msra.mxu0 %v2129_v28 }
 0x22e   :  { %1882 = vmatprep.subr.bf16.mxu0 %v2129_v28 }
 0x231   :  { %1883 = vmatpush3.bf16.msra.mxu0 %v2129_v28 }
 0x232   :  { %1884 = vmatprep.subr.bf16.mxu0 %v2129_v28 }
 0x235   :  { %1885 = vmatpush3.bf16.msra.mxu0 %v2129_v28 }
 0x236   :  { %v946_v9 = vpop.f32.mrb[16].mxu1  ;;  %1886 = vmatprep.subr.bf16.mxu0 %v2129_v28 }
 0x237   :  { %v953_v10 = vmul.f32 %v946_v9, %v2443_v46  ;;  %v1716_v11 = vpop.f32.mrb[17].mxu1 }
 0x238   :  { %v949_v12 = vpop.f32.mrb[18].mxu1 }
 0x239   :  { %v954_v13 = vmul.f32 %v949_v12, %v2446_v51  ;;  %1887 = vmatpush3.bf16.msra.mxu0 %v2129_v28  ;;  %v1717_v14 = vpop.f32.mrb[19].mxu1  ;;  %1750 = vmatprep.mubr.f32.mxu0 %v953_v10 }
 0x23a   :  { %1888 = vmatprep.subr.bf16.mxu0 %v2129_v28 }
 0x23c   :  { %1751 = vmatmul.mubr.f32.vlgmr.msra.gmra.mrb[12].mxu0 %v954_v13 }
 0x23d   :  { %1889 = vmatpush3.bf16.msra.mxu0 %v2129_v28 }
 0x23e   :  { %1890 = vmatprep.subr.bf16.mxu0 %v2129_v28 }
 0x241   :  { %1891 = vmatpush3.bf16.msra.mxu0 %v2129_v28 }
 0x242   :  { %1892 = vmatprep.subr.bf16.mxu0 %v2129_v28 }
 0x245   :  { %1893 = vmatpush3.bf16.msra.mxu0 %v2129_v28 }
 0x246   :  { %1894 = vmatprep.subr.bf16.mxu0 %v2129_v28 }
 0x249   :  { %1895 = vmatpush3.bf16.msra.mxu0 %v2129_v28 }
 0x24a   :  { %1896 = vmatprep.subr.bf16.mxu0 %v2129_v28 }
 0x24d   :  { %1897 = vmatpush3.bf16.msra.mxu0 %v2129_v28 }
 0x24e   :  { %1898 = vmatprep.subr.bf16.mxu0 %v2129_v28 }
 0x251   :  { %1899 = vmatpush3.bf16.msra.mxu0 %v2129_v28 }
 0x252   :  { %1900 = vmatprep.subr.bf16.mxu0 %v2129_v28 }
 0x255   :  { %1901 = vmatpush3.bf16.msra.mxu0 %v2129_v28 }
 0x256   :  { %v1097_v15 = vpop.f32.mrb[20].mxu1  ;;  %1902 = vmatprep.subr.bf16.mxu0 %v2129_v28 }
 0x257   :  { %v1104_v16 = vmul.f32 %v1097_v15, %v2443_v46  ;;  %v1771_v17 = vpop.f32.mrb[21].mxu1 }
 0x258   :  { %v1100_v18 = vpop.f32.mrb[22].mxu1 }
 0x259   :  { %v1105_v19 = vmul.f32 %v1100_v18, %v2446_v51  ;;  %1903 = vmatpush3.bf16.msra.mxu0 %v2129_v28  ;;  %v1772_v20 = vpop.f32.mrb[23].mxu1  ;;  %1805 = vmatprep.mubr.f32.mxu0 %v1104_v16 }
 0x25c   :  { %1806 = vmatmul.mubr.f32.vlgmr.msra.gmra.mrb[14].mxu0 %v1105_v19 }
 0x28f   :  { %v1532_v21 = vpop.f32.mrb[4].mxu0 }
 0x290   :  { %v419_v22 = vpop.f32.mrb[5].mxu0 }
 0x291   :  { %v430_v23 = vand.u32 2147483647, %v419_v22  ;;  %v428_v41 = vmin.f32 %v419_v22, 0.0 }
 0x293   :  { %v432_v24 = vsub.f32 0.0, %v430_v23 }
 0x295   :  { %v434_v25 = vmul.f32 1.442695, %v432_v24 }
 0x297   :  { %1949 = vpow2.f32 %v434_v25 }
 0x2a1   :  { %v1950_v33 = vpop.eup %1949 }
 0x2a2   :  { %v438_v34 = vadd.f32 1.0, %v1950_v33 }
 0x2af   :  { %v1587_v26 = vpop.f32.mrb[6].mxu0 }
 0x2b0   :  { %v568_v27 = vpop.f32.mrb[7].mxu0 }
 0x2b1   :  { %v577_v29 = vsub.f32 0.0, %v568_v27 }
 0x2b3   :  { %v581_v30 = vand.u32 2147483647, %v577_v29  ;;  %v579_v42 = vmin.f32 %v577_v29, 0.0 }
 0x2b5   :  { %v583_v31 = vsub.f32 0.0, %v581_v30 }
 0x2b7   :  { %v585_v32 = vmul.f32 1.442695, %v583_v31 }
 0x2b9   :  { %1951 = vpow2.f32 %v585_v32 }
 0x2ba   :  { %1953 = vlog2.f32 %v438_v34 }
 0x2c3   :  { %v1952_v28 = vpop.eup %1951 }
 0x2c4   :  { %v589_v35 = vadd.f32 1.0, %v1952_v28  ;;  %v1954_v36 = vpop.eup %1953 }
 0x2c5   :  { %v441_v37 = vmul.f32 0.6931472, %v1954_v36 }
 0x2c6   :  { %1955 = vlog2.f32 %v589_v35 }
 0x2c7   :  { %v444_v45 = vsub.f32 %v428_v41, %v441_v37 }
 0x2cf   :  { %v1642_v38 = vpop.f32.mrb[8].mxu0 }
 0x2d0   :  { %v1956_v39 = vpop.eup %1955  ;;  %v719_v40 = vpop.f32.mrb[9].mxu0 }
 0x2d1   :  { %v592_v43 = vmul.f32 0.6931472, %v1956_v39  ;;  %v728_v44 = vsub.f32 0.0, %v719_v40  ;;  %v1225_v39 = vld [vmem:[#allocation2] sm:$0x1] }
 0x2d3   :  { %v595_v46 = vsub.f32 %v579_v42, %v592_v43  ;;  %v732_v47 = vand.u32 2147483647, %v728_v44  ;;  %v730_v56 = vmin.f32 %v728_v44, 0.0 }
 0x2d5   :  { %v597_v48 = vadd.f32 %v595_v46, %v444_v45  ;;  %v734_v49 = vsub.f32 0.0, %v732_v47 }
 0x2d7   :  { %v736_v50 = vmul.f32 1.442695, %v734_v49 }
 0x2d9   :  { %1957 = vpow2.f32 %v736_v50 }
 0x2e3   :  { %v1958_v51 = vpop.eup %1957 }
 0x2e4   :  { %v740_v52 = vadd.f32 1.0, %v1958_v51 }
 0x2e6   :  { %1959 = vlog2.f32 %v740_v52 }
 0x2ef   :  { %v1697_v53 = vpop.f32.mrb[10].mxu0 }
 0x2f0   :  { %v1960_v54 = vpop.eup %1959  ;;  %v870_v55 = vpop.f32.mrb[11].mxu0 }
 0x2f1   :  { %v743_v57 = vmul.f32 0.6931472, %v1960_v54  ;;  %v879_v58 = vsub.f32 0.0, %v870_v55 }
 0x2f3   :  { %v746_v59 = vsub.f32 %v730_v56, %v743_v57  ;;  %v883_v60 = vand.u32 2147483647, %v879_v58  ;;  %v881_v5 = vmin.f32 %v879_v58, 0.0 }
 0x2f5   :  { %v748_v61 = vadd.f32 %v746_v59, %v597_v48  ;;  %v885_v62 = vsub.f32 0.0, %v883_v60 }
 0x2f7   :  { %v887_v63 = vmul.f32 1.442695, %v885_v62 }
 0x2f9   :  { %1961 = vpow2.f32 %v887_v63 }
 0x303   :  { %v1962_v0 = vpop.eup %1961 }
 0x304   :  { %v891_v1 = vadd.f32 1.0, %v1962_v0 }
 0x306   :  { %1963 = vlog2.f32 %v891_v1 }
 0x30f   :  { %v1752_v2 = vpop.f32.mrb[12].mxu0 }
 0x310   :  { %v1964_v3 = vpop.eup %1963  ;;  %v1021_v4 = vpop.f32.mrb[13].mxu0 }
 0x311   :  { %v894_v6 = vmul.f32 0.6931472, %v1964_v3  ;;  %v1030_v7 = vsub.f32 0.0, %v1021_v4 }
 0x313   :  { %v897_v8 = vsub.f32 %v881_v5, %v894_v6  ;;  %v1034_v9 = vand.u32 2147483647, %v1030_v7  ;;  %v1032_v18 = vmin.f32 %v1030_v7, 0.0 }
 0x315   :  { %v899_v10 = vadd.f32 %v897_v8, %v748_v61  ;;  %v1036_v11 = vsub.f32 0.0, %v1034_v9 }
 0x317   :  { %v1038_v12 = vmul.f32 1.442695, %v1036_v11 }
 0x319   :  { %1965 = vpow2.f32 %v1038_v12 }
 0x323   :  { %v1966_v13 = vpop.eup %1965 }
 0x324   :  { %v1042_v14 = vadd.f32 1.0, %v1966_v13 }
 0x326   :  { %1967 = vlog2.f32 %v1042_v14 }
 0x32f   :  { %v1807_v15 = vpop.f32.mrb[14].mxu0 }
 0x330   :  { %v1968_v16 = vpop.eup %1967  ;;  %v1172_v17 = vpop.f32.mrb[15].mxu0 }
 0x331   :  { %v1045_v19 = vmul.f32 0.6931472, %v1968_v16  ;;  %v1181_v20 = vsub.f32 0.0, %v1172_v17 }
 0x333   :  { %v1048_v21 = vsub.f32 %v1032_v18, %v1045_v19  ;;  %v1185_v22 = vand.u32 2147483647, %v1181_v20  ;;  %v1183_v30 = vmin.f32 %v1181_v20, 0.0 }
 0x335   :  { %v1187_v23 = vsub.f32 0.0, %v1185_v22  ;;  %v1050_v24 = vadd.f32 %v1048_v21, %v899_v10 }
 0x337   :  { %v1189_v25 = vmul.f32 1.442695, %v1187_v23 }
 0x339   :  { %1969 = vpow2.f32 %v1189_v25 }
 0x343   :  { %v1970_v26 = vpop.eup %1969 }
 0x344   :  { %v1193_v27 = vadd.f32 1.0, %v1970_v26 }
 0x346   :  { %1971 = vlog2.f32 %v1193_v27 }
 0x350   :  { %v1972_v29 = vpop.eup %1971 }
 0x351   :  { %v1196_v31 = vmul.f32 0.6931472, %v1972_v29 }
 0x353   :  { %v1199_v32 = vsub.f32 %v1183_v30, %v1196_v31 }
 0x355   :  { %v1201_v33 = vadd.f32 %v1199_v32, %v1050_v24 }
 0x357   :  { %1215 = vperm.xlu1 %1931, %v1201_v33  }
 0x3d6   :  { %v1216_v34 = vpop.permute.xlu1 %1215 }
 0x3d7   :  { %v1227_v28 = vrot.slane %v1216_v34, 4 }
 0x3d9   :  { %v1228_v35 = vadd.f32 %v1227_v28, %v1216_v34 }
 0x3db   :  { %v1229_v36 = vrot.slane %v1228_v35, 2 }
 0x3dd   :  { %v1230_v37 = vadd.f32 %v1229_v36, %v1228_v35 }
 0x3df   :  { %v1231_v38 = vrot.slane %v1230_v37, 1 }
 0x3e1   :  { %v1232_v40 = vadd.f32 %v1231_v38, %v1230_v37 }
 0x3e3   :  { %v1233_v41 = vadd.f32 %v1232_v40, %v1225_v39 }
 0x3e5   :  { %1234 = vst [vmem:[#allocation2] sm:$0x1] %v1233_v41 }
 0x3ec   :  { %v1238_v42 = vld [vmem:[#allocation2] sm:$0x1] }
 0x3ed   :  { %1239 = vst [vmem:[#allocation12] sm:$0x1] %v1238_v42 }
 0x3ee   :  { %2094 = shalt.err (!%p2091_p2)
}
 0x3ef   :  { %s2095_s21 = scalar_lea.hbm %s2555_s5, 16 }
 0x3f0   :  { %p2096_p3 = scmp.ne.s32.totalorder %s2555_s5, %s2095_s21  ;;  %p2099_p4 = scmp.lt.u32.totalorder %s2095_s21, %s2555_s5 }
 0x3f2   :  { %p2101_p5 = pnand %p2099_p4, %p2096_p3 }
 0x3f4   :  { %2104 = shalt.err (!%p2101_p5)
}
 0x3f5   :  { %1249 = dma.vmem_to_hbm [thread:$0]  %s1247_s6, 16, %s2555_s5, [#allocation5]  }
 0x3f6   :  { %2111 = dma.done.wait [#allocation5], 16  }
 0x3f7   :  { %2112 = vsyncadd [#allocation5], 4294967280 }
 0x3f8   :  { %1253 = vsyncpa [#allocation4], 1 }
 0x3f9   :  { %1254 = vsyncpa [#allocation7], 1 }
 0x3fa   :  { %1255 = vsyncpa [#allocation10], 1 }
 0x3fb   :  { %1256 = vsyncpa [#allocation5], 1 }

</bundles_post_ra>
